<compile_context>
chip_gen: v7x
topology: tpu7x:2x2x1
jax: 0.10.0
libtpu: 0.0.40
codegen_flags: <defaults>
</compile_context>

<pallas_src>
import functools

import jax
import jax.numpy as jnp
from jax.experimental import pallas as pl
from jax.experimental.pallas import tpu as pltpu

_NEG = -1e30  # finite "minus infinity" (avoids inf-inf NaNs in online softmax)


def _round_up(a, b):
    return ((a + b - 1) // b) * b


# --------------------------------------------------------------------------------------
# Kernels
# --------------------------------------------------------------------------------------

def _linear_act_kernel(x_ref, w_ref, b_ref, o_ref, *, act):
    """o = act(x @ w + b) for one row tile; bf16 operands, f32 accumulation."""
    acc = jnp.dot(x_ref[...].astype(jnp.bfloat16), w_ref[...],
                  preferred_element_type=jnp.float32)
    acc = acc + b_ref[...]
    if act == "relu":
        acc = jnp.maximum(acc, 0.0)
    elif act == "elu":
        acc = jnp.where(acc > 0.0, acc, jnp.exp(jnp.minimum(acc, 0.0)) - 1.0)
    o_ref[...] = acc.astype(o_ref.dtype)


def _gat_attn_kernel(adst_ref, asrcT_ref, xs_ref, mask_ref, b_ref, o_ref,
                     m_sc, l_sc, acc_sc, *, heads, negative_slope):
    """Source-blocked masked GAT attention with online softmax (bias + ELU fused).

    Grid = (target row tiles, source blocks).  Output tile is resident across the
    source axis; m/l/acc scratch carries the running softmax state per head.
    """
    f32 = jnp.float32
    j = pl.program_id(1)
    n_src = pl.num_programs(1)

    @pl.when(j == 0)
    def _():
        m_sc[...] = jnp.full(m_sc.shape, _NEG, dtype=m_sc.dtype)
        l_sc[...] = jnp.zeros_like(l_sc)
        acc_sc[...] = jnp.zeros_like(acc_sc)

    a_d = adst_ref[...].astype(f32)          # (TM, H)   per-target alpha_dst
    a_sT = asrcT_ref[...].astype(f32)        # (H, TS)   per-source alpha_src (transposed)
    xs = xs_ref[...]                         # (TS, HC)  source features (bf16)
    edge = mask_ref[...] > 0                 # (TM, TS)  int8 adjacency -> bool

    H = heads
    C = xs.shape[1] // H

    for h in range(H):                                                    # static head loop
        e = a_d[:, h:h + 1] + a_sT[h:h + 1, :]                            # (TM, TS)
        e = jnp.where(e >= 0.0, e, negative_slope * e)                    # LeakyReLU(0.2)
        e = jnp.where(edge, e, _NEG)                                      # mask non-edges
        m_prev = m_sc[:, h:h + 1]
        m_new = jnp.maximum(m_prev, jnp.max(e, axis=1, keepdims=True))    # (TM, 1)
        corr = jnp.exp(m_prev - m_new)
        p = jnp.where(edge, jnp.exp(e - m_new), 0.0)                      # un-normalised
        l_sc[:, h:h + 1] = corr * l_sc[:, h:h + 1] + jnp.sum(p, axis=1, keepdims=True)
        m_sc[:, h:h + 1] = m_new
        acc_sc[:, h * C:(h + 1) * C] = (
            corr * acc_sc[:, h * C:(h + 1) * C]
            + jnp.dot(p.astype(xs.dtype), xs[:, h * C:(h + 1) * C],
                      preferred_element_type=f32))

    @pl.when(j == n_src - 1)
    def _():
        bias = b_ref[...].astype(f32)                                     # (1, HC)
        outs = []
        for h in range(H):
            inv_l = pl.reciprocal(jnp.maximum(l_sc[:, h:h + 1], 1e-20), approx=True)
            outs.append(acc_sc[:, h * C:(h + 1) * C] * inv_l)             # deferred norm
        out = jnp.concatenate(outs, axis=-1) + bias
        out = jnp.where(out > 0.0, out, jnp.exp(jnp.minimum(out, 0.0)) - 1.0)  # ELU
        o_ref[...] = out.astype(o_ref.dtype)


def _mlp2_kernel(x_ref, w1_ref, b1_ref, w2_ref, b2_ref, o_ref):
    """Linear -> ReLU -> Linear (EncoderLayer) on a single tiny row block."""
    f32 = jnp.float32
    h = jnp.dot(x_ref[...].astype(f32), w1_ref[...].astype(f32),
                preferred_element_type=f32) + b1_ref[...].astype(f32)
    h = jnp.maximum(h, 0.0)
    o = jnp.dot(h, w2_ref[...].astype(f32),
                preferred_element_type=f32) + b2_ref[...].astype(f32)
    o_ref[...] = o.astype(o_ref.dtype)


def _fc_pool_head_kernel(x_ref, valid_ref, wfc_ref, bfc_ref,
                         w1_ref, b1_ref, w2_ref, b2_ref, w3_ref, b3_ref,
                         o_ref, acc_ref, *, inv_n):
    """fc + ReLU + global-mean-pool + final 3-layer MLP head, fused.

    The column-sum accumulates into a (1, hidden) scratch across the row grid
    ("arbitrary" axis); the tiny head runs once in the final step.
    """
    f32 = jnp.float32
    i = pl.program_id(0)

    @pl.when(i == 0)
    def _():
        acc_ref[...] = jnp.zeros_like(acc_ref)

    h = jnp.dot(x_ref[...].astype(jnp.bfloat16), wfc_ref[...],
                preferred_element_type=f32) + bfc_ref[...]
    h = jnp.maximum(h, 0.0) * valid_ref[...]          # zero padded rows before pooling
    acc_ref[...] += jnp.sum(h, axis=0, keepdims=True)

    @pl.when(i == pl.num_programs(0) - 1)
    def _():
        z = acc_ref[...] * inv_n                      # global mean pool (1, hidden_pad)
        z = jnp.dot(z, w1_ref[...], preferred_element_type=f32) + b1_ref[...]
        z = jnp.maximum(z, 0.0)
        z = jnp.dot(z, w2_ref[...], preferred_element_type=f32) + b2_ref[...]
        z = jnp.maximum(z, 0.0)
        z = jnp.dot(z, w3_ref[...], preferred_element_type=f32) + b3_ref[...]
        o_ref[...] = z.astype(o_ref.dtype)


# --------------------------------------------------------------------------------------
# Wrappers (grid / BlockSpec plumbing)
# --------------------------------------------------------------------------------------

def linear_pallas(x, w, b, *, act="none", tile_m, out_dtype=None):
    """act(x @ w + b) tiled over rows; weights resident, bf16 operands, lane-padded output."""
    M, K = x.shape
    Kw, Nout = w.shape
    assert K == Kw and b.shape == (Nout,)
    out_dtype = x.dtype if out_dtype is None else out_dtype
    Npad = _round_up(Nout, 128)                       # lane-dense (unmasked) output stores
    if Npad != Nout:
        w = jnp.pad(w, ((0, 0), (0, Npad - Nout)))
        b = jnp.pad(b, (0, Npad - Nout))
    Mpad = _round_up(M, tile_m)
    if Mpad != M:
        x = jnp.pad(x, ((0, Mpad - M), (0, 0)))
    x = x.astype(jnp.bfloat16)
    w = w.astype(jnp.bfloat16)
    b2 = b.reshape(1, Npad).astype(jnp.float32)
    out = pl.pallas_call(
        functools.partial(_linear_act_kernel, act=act),
        out_shape=jax.ShapeDtypeStruct((Mpad, Npad), out_dtype),
        grid=(Mpad // tile_m,),
        in_specs=[
            pl.BlockSpec((tile_m, K), lambda i: (i, 0)),
            pl.BlockSpec((K, Npad), lambda i: (0, 0)),     # weight resident across tiles
            pl.BlockSpec((1, Npad), lambda i: (0, 0)),
        ],
        out_specs=pl.BlockSpec((tile_m, Npad), lambda i: (i, 0)),
        compiler_params=pltpu.CompilerParams(dimension_semantics=("parallel",)),
        cost_estimate=pl.CostEstimate(
            flops=2 * Mpad * K * Npad, transcendentals=0,
            bytes_accessed=2 * (Mpad * K + K * Npad)
            + Mpad * Npad * jnp.dtype(out_dtype).itemsize),
    )(x, w, b2)
    return out[:M, :Nout]


def gat_attention_pallas(alpha_dst, alpha_src_t, xp_src, mask, bias, *,
                         heads, tile_m, tile_s, out_dtype):
    """Dense masked GAT attention, tiled over target rows and source blocks."""
    Np, HC = xp_src.shape
    H = heads
    assert Np % tile_m == 0 and Np % tile_s == 0 and HC % H == 0
    return pl.pallas_call(
        functools.partial(_gat_attn_kernel, heads=heads, negative_slope=0.2),
        out_shape=jax.ShapeDtypeStruct((Np, HC), out_dtype),
        grid=(Np // tile_m, Np // tile_s),
        in_specs=[
            pl.BlockSpec((tile_m, H), lambda i, j: (i, 0)),       # alpha_dst (target tile)
            pl.BlockSpec((H, tile_s), lambda i, j: (0, j)),       # alpha_src^T (source block)
            pl.BlockSpec((tile_s, HC), lambda i, j: (j, 0)),      # source features (bf16)
            pl.BlockSpec((tile_m, tile_s), lambda i, j: (i, j)),  # int8 adjacency block
            pl.BlockSpec((1, HC), lambda i, j: (0, 0)),           # bias (resident)
        ],
        out_specs=pl.BlockSpec((tile_m, HC), lambda i, j: (i, 0)),
        scratch_shapes=[pltpu.VMEM((tile_m, H), jnp.float32),     # running max
                        pltpu.VMEM((tile_m, H), jnp.float32),     # running denom
                        pltpu.VMEM((tile_m, HC), jnp.float32)],   # running numerator
        compiler_params=pltpu.CompilerParams(
            dimension_semantics=("parallel", "arbitrary")),
    )(alpha_dst, alpha_src_t, xp_src, mask, bias)


def mlp2_pallas(x, w1, b1, w2, b2):
    M = x.shape[0]
    out_dim = w2.shape[1]
    return pl.pallas_call(
        _mlp2_kernel,
        out_shape=jax.ShapeDtypeStruct((M, out_dim), jnp.float32),
        grid=(1,),
        in_specs=[
            pl.BlockSpec(x.shape, lambda i: (0, 0)),
            pl.BlockSpec(w1.shape, lambda i: (0, 0)),
            pl.BlockSpec((1, b1.shape[0]), lambda i: (0, 0)),
            pl.BlockSpec(w2.shape, lambda i: (0, 0)),
            pl.BlockSpec((1, b2.shape[0]), lambda i: (0, 0)),
        ],
        out_specs=pl.BlockSpec((M, out_dim), lambda i: (0, 0)),
        compiler_params=pltpu.CompilerParams(dimension_semantics=("arbitrary",)),
    )(x, w1, b1.reshape(1, -1), w2, b2.reshape(1, -1))


def fc_pool_head_pallas(h, row_valid, fc_p, head_p, *, n_nodes, tile_m):
    """Fused fc + ReLU + mean-pool + final MLP head; single pallas_call."""
    Np, HC = h.shape
    hidden = fc_p["w"].shape[1]
    mid = head_p["w1"].shape[1]
    num_classes = head_p["w3"].shape[1]
    hpad = _round_up(hidden, 128)
    mpad = _round_up(mid, 128)
    cpad = _round_up(num_classes, 128)
    f32 = jnp.float32

    wfc = jnp.pad(fc_p["w"], ((0, 0), (0, hpad - hidden))).astype(jnp.bfloat16)
    bfc = jnp.pad(fc_p["b"], (0, hpad - hidden)).reshape(1, hpad).astype(f32)
    w1 = jnp.pad(head_p["w1"], ((0, hpad - hidden), (0, mpad - mid))).astype(f32)
    b1 = jnp.pad(head_p["b1"], (0, mpad - mid)).reshape(1, mpad).astype(f32)
    w2 = jnp.pad(head_p["w2"], ((0, mpad - mid), (0, mpad - mid))).astype(f32)
    b2 = jnp.pad(head_p["b2"], (0, mpad - mid)).reshape(1, mpad).astype(f32)
    w3 = jnp.pad(head_p["w3"], ((0, mpad - mid), (0, cpad - num_classes))).astype(f32)
    b3 = jnp.pad(head_p["b3"], (0, cpad - num_classes)).reshape(1, cpad).astype(f32)

    out = pl.pallas_call(
        functools.partial(_fc_pool_head_kernel, inv_n=1.0 / n_nodes),
        out_shape=jax.ShapeDtypeStruct((1, cpad), f32),
        grid=(Np // tile_m,),
        in_specs=[
            pl.BlockSpec((tile_m, HC), lambda i: (i, 0)),   # node-feature row tile
            pl.BlockSpec((tile_m, 1), lambda i: (i, 0)),    # row validity
            pl.BlockSpec((HC, hpad), lambda i: (0, 0)),     # fc weight (resident)
            pl.BlockSpec((1, hpad), lambda i: (0, 0)),
            pl.BlockSpec((hpad, mpad), lambda i: (0, 0)),
            pl.BlockSpec((1, mpad), lambda i: (0, 0)),
            pl.BlockSpec((mpad, mpad), lambda i: (0, 0)),
            pl.BlockSpec((1, mpad), lambda i: (0, 0)),
            pl.BlockSpec((mpad, cpad), lambda i: (0, 0)),
            pl.BlockSpec((1, cpad), lambda i: (0, 0)),
        ],
        out_specs=pl.BlockSpec((1, cpad), lambda i: (0, 0)),
        scratch_shapes=[pltpu.VMEM((1, hpad), f32)],
        compiler_params=pltpu.CompilerParams(dimension_semantics=("arbitrary",)),
    )(h, row_valid, wfc, bfc, w1, b1, w2, b2, w3, b3)
    return out[:, :num_classes]


# --------------------------------------------------------------------------------------
# Full GATComplex forward
# --------------------------------------------------------------------------------------

def build_adjacency_mask(edge_index, n_nodes, n_padded):
    """edge_index -> dense int8 adjacency (target-row, source-col) with self-loops.

    Plain-JAX glue; for a static graph, call once and pass `adj_mask=` to the forward.
    """
    src, dst = edge_index[0], edge_index[1]
    mask = jnp.zeros((n_padded, n_padded), jnp.int8)
    mask = mask.at[dst, src].set(1)
    idx = jnp.arange(n_nodes)
    mask = mask.at[idx, idx].set(1)
    return mask


def gat_complex_forward(params, x, edge_index, rates, *, num_heads, hidden_dim,
                        adj_mask=None):
    N = x.shape[0]
    H, C = num_heads, hidden_dim
    HC = H * C
    bf16 = jnp.bfloat16

    # Tiling: small graphs run as a single tile; large graphs use 512-row linear tiles,
    # 128-row attention target tiles and 512-node source blocks (bounded VMEM, v7x-safe).
    if N <= 512:
        Np = _round_up(max(N, 8), 8)
        tile_lin = tile_att_m = tile_att_s = Np
    else:
        Np = _round_up(N, 512)
        tile_lin, tile_att_m, tile_att_s = 512, 128, 512

    x_pad = jnp.pad(x, ((0, Np - N), (0, 0))).astype(bf16)
    row_valid = (jnp.arange(Np) < N).astype(jnp.float32)[:, None]        # (Np, 1)

    if adj_mask is None:
        adj_mask = build_adjacency_mask(edge_index, N, Np)               # int8 (Np, Np)

    def gat_layer(h_in, p):
        K = h_in.shape[1]
        w = p["w"]
        # Fold per-head attention projections (W_h @ a_src_h, W_h @ a_dst_h) into the
        # feature GEMM as 2H extra columns -> per-node alpha scalars come out of the
        # same MXU pass (no per-tile degenerate matmuls in the attention kernel).
        w3 = w.reshape(K, H, C)
        w_as = jnp.einsum("khc,hc->kh", w3, p["a_src"])
        w_ad = jnp.einsum("khc,hc->kh", w3, p["a_dst"])
        w_aug = jnp.concatenate([w, w_as, w_ad], axis=1)                 # (K, HC + 2H)
        zeros_b = jnp.zeros((HC + 2 * H,), jnp.float32)
        xp_aug = linear_pallas(h_in, w_aug, zeros_b, act="none",
                               tile_m=tile_lin, out_dtype=bf16)          # (Np, HC + 2H)
        xp = xp_aug[:, :HC]                                              # node features
        alpha_src_t = jnp.transpose(xp_aug[:, HC:HC + H])                # (H, Np)
        alpha_dst = xp_aug[:, HC + H:HC + 2 * H]                         # (Np, H)
        bias = p["bias"].reshape(1, HC).astype(jnp.float32)
        return gat_attention_pallas(alpha_dst, alpha_src_t, xp, adj_mask, bias,
                                    heads=H, tile_m=tile_att_m, tile_s=tile_att_s,
                                    out_dtype=bf16)

    # conv1 (+ ELU fused)
    h1 = gat_layer(x_pad, params["conv1"])                               # (Np, HC) bf16

    # rates encoder + broadcast to all nodes (broadcast/concat is glue)
    enc = mlp2_pallas(rates.reshape(1, -1).astype(jnp.float32),
                      params["enc"]["w1"], params["enc"]["b1"],
                      params["enc"]["w2"], params["enc"]["b2"])          # (1, hidden)
    enc_tiled = jnp.broadcast_to(enc.astype(bf16), (Np, C))
    h_cat = jnp.concatenate([h1, enc_tiled], axis=1)                     # (Np, HC + hidden)

    # conv2 (+ ELU fused)
    h2 = gat_layer(h_cat, params["conv2"])                               # (Np, HC) bf16

    # fc + ReLU + global mean pool + final head, fused into one kernel.
    # TODO(synk): exact NeuralNetwork(hidden, 2*hidden, 3, num_classes) architecture is not
    # given; assumed 3 Linear layers (hidden->2h, 2h->2h, 2h->classes) with ReLU between.
    out = fc_pool_head_pallas(h2, row_valid, params["fc"], params["final"],
                              n_nodes=N, tile_m=tile_lin)                # (1, classes)
    return out


# --------------------------------------------------------------------------------------
# Pure-JAX reference (same dense-masked-GAT math, f32) and demo
# --------------------------------------------------------------------------------------

def _reference_forward(params, x, edge_index, rates, *, num_heads, hidden_dim):
    N = x.shape[0]
    H, C = num_heads, hidden_dim
    mask = jnp.zeros((N, N), jnp.float32)
    mask = mask.at[edge_index[1], edge_index[0]].set(1.0)
    mask = mask.at[jnp.arange(N), jnp.arange(N)].set(1.0)

    def elu(v):
        return jnp.where(v > 0.0, v, jnp.exp(jnp.minimum(v, 0.0)) - 1.0)

    def gatconv(xin, p):
        xp = xin @ p["w"]
        xh = xp.reshape(N, H, C)
        a_s = jnp.einsum("nhc,hc->nh", xh, p["a_src"])
        a_d = jnp.einsum("nhc,hc->nh", xh, p["a_dst"])
        e = a_d[:, None, :] + a_s[None, :, :]
        e = jnp.where(e >= 0.0, e, 0.2 * e)
        e = jnp.where(mask[:, :, None] > 0.0, e, -1e30)
        e = e - e.max(axis=1, keepdims=True)
        p_att = jnp.exp(e) * mask[:, :, None]
        p_att = p_att / jnp.maximum(p_att.sum(axis=1, keepdims=True), 1e-20)
        out = jnp.einsum("mnh,nhc->mhc", p_att, xh).reshape(N, H * C)
        return out + p["bias"]

    h1 = elu(gatconv(x, params["conv1"]))
    enc = jnp.maximum(rates.reshape(1, -1) @ params["enc"]["w1"] + params["enc"]["b1"], 0.0)
    enc = enc @ params["enc"]["w2"] + params["enc"]["b2"]
    hcat = jnp.concatenate([h1, jnp.broadcast_to(enc, (N, hidden_dim))], axis=1)
    h2 = elu(gatconv(hcat, params["conv2"]))
    hf = jnp.maximum(h2 @ params["fc"]["w"] + params["fc"]["b"], 0.0)
    pooled = hf.mean(axis=0, keepdims=True)
    z = jnp.maximum(pooled @ params["final"]["w1"] + params["final"]["b1"], 0.0)
    z = jnp.maximum(z @ params["final"]["w2"] + params["final"]["b2"], 0.0)
    z = z @ params["final"]["w3"] + params["final"]["b3"]
    return z


if __name__ == "__main__":
    # Small shapes consistent with the module.
    N, input_dim, hidden_dim = 8, 16, 32
    num_heads, n_rates, embedding_size, num_classes = 4, 4, 8, 3
    HC = num_heads * hidden_dim

    key = jax.random.PRNGKey(0)
    ks = jax.random.split(key, 22)

    def nrm(k, shape, s=0.1):
        return s * jax.random.normal(k, shape, dtype=jnp.float32)

    params = {
        "conv1": {"w": nrm(ks[0], (input_dim, HC)),
                  "a_src": nrm(ks[1], (num_heads, hidden_dim)),
                  "a_dst": nrm(ks[2], (num_heads, hidden_dim)),
                  "bias": nrm(ks[3], (HC,))},
        "enc": {"w1": nrm(ks[4], (n_rates, embedding_size)), "b1": nrm(ks[5], (embedding_size,)),
                "w2": nrm(ks[6], (embedding_size, hidden_dim)), "b2": nrm(ks[7], (hidden_dim,))},
        "conv2": {"w": nrm(ks[8], (HC + hidden_dim, HC)),
                  "a_src": nrm(ks[9], (num_heads, hidden_dim)),
                  "a_dst": nrm(ks[10], (num_heads, hidden_dim)),
                  "bias": nrm(ks[11], (HC,))},
        "fc": {"w": nrm(ks[12], (HC, hidden_dim)), "b": nrm(ks[13], (hidden_dim,))},
        "final": {"w1": nrm(ks[14], (hidden_dim, 2 * hidden_dim)), "b1": nrm(ks[15], (2 * hidden_dim,)),
                  "w2": nrm(ks[16], (2 * hidden_dim, 2 * hidden_dim)), "b2": nrm(ks[17], (2 * hidden_dim,)),
                  "w3": nrm(ks[18], (2 * hidden_dim, num_classes)), "b3": nrm(ks[19], (num_classes,))},
    }

    x = jax.random.normal(ks[20], (N, input_dim), dtype=jnp.float32)
    rates = jax.random.normal(ks[21], (n_rates,), dtype=jnp.float32)

    # Deterministic bidirectional ring graph (self-loops added internally, like PyG).
    ring_src = jnp.arange(N)
    ring_dst = (jnp.arange(N) + 1) % N
    edge_index = jnp.stack([jnp.concatenate([ring_src, ring_dst]),
                            jnp.concatenate([ring_dst, ring_src])])      # (2, 2N)

    out = gat_complex_forward(params, x, edge_index, rates,
                              num_heads=num_heads, hidden_dim=hidden_dim)
    out = jax.block_until_ready(out)

    ref = _reference_forward(params, x, edge_index, rates,
                             num_heads=num_heads, hidden_dim=hidden_dim)

    assert out.shape == (1, num_classes), out.shape
    # bf16 MXU operands + approx reciprocal -> looser tolerance than the f32 reference.
    assert jnp.allclose(out, ref, atol=2e-2, rtol=2e-2), "mismatch vs reference"

    print("KERNEL_OK")
</pallas_src>

<mosaic_0001>
module attributes {stable_mosaic.version = 11 : i64} {
  func.func @_linear_act_kernel(%arg0: i32, %arg1: memref<8x16xbf16, #tpu.memory_space<vmem>>, %arg2: memref<16x256xbf16, #tpu.memory_space<vmem>>, %arg3: memref<1x256xf32, #tpu.memory_space<vmem>>, %arg4: memref<8x256xbf16, #tpu.memory_space<vmem>>) attributes {dimension_semantics = [#tpu.dimension_semantics<parallel>], iteration_bounds = array<i64: 1>, scalar_prefetch = 0 : i64, scratch_operands = 0 : i64, tpu.core_type = #tpu.core_type<tc>, window_params = [{transform_indices = @transform_0, window_bounds = array<i64: 8, 16>}, {pipeline_mode = #tpu.pipeline_mode<synchronous>, transform_indices = @transform_1, window_bounds = array<i64: 16, 256>}, {pipeline_mode = #tpu.pipeline_mode<synchronous>, transform_indices = @transform_2, window_bounds = array<i64: 1, 256>}, {transform_indices = @transform_3, window_bounds = array<i64: 8, 256>}]} {
    %c0 = arith.constant 0 : index
    %c0_0 = arith.constant 0 : index
    %0 = vector.load %arg1[%c0, %c0_0] : memref<8x16xbf16, #tpu.memory_space<vmem>>, vector<8x16xbf16>
    %c0_1 = arith.constant 0 : index
    %c0_2 = arith.constant 0 : index
    %1 = vector.load %arg2[%c0_1, %c0_2] : memref<16x256xbf16, #tpu.memory_space<vmem>>, vector<16x256xbf16>
    %cst = arith.constant dense<0.000000e+00> : vector<8x256xf32>
    %2 = tpu.matmul %0, %1, %cst {dimension_numbers = #tpu.dot_dimension_numbers<[1], [0], [0], [1], [0, 0, 1, 1], [], []>} : vector<8x16xbf16>, vector<16x256xbf16>, vector<8x256xf32> -> vector<8x256xf32>
    %c0_3 = arith.constant 0 : index
    %c0_4 = arith.constant 0 : index
    %3 = vector.load %arg3[%c0_3, %c0_4] : memref<1x256xf32, #tpu.memory_space<vmem>>, vector<1x256xf32>
    %4 = vector.broadcast %3 : vector<1x256xf32> to vector<8x256xf32>
    %5 = arith.addf %2, %4 : vector<8x256xf32>
    %6 = arith.truncf %5 : vector<8x256xf32> to vector<8x256xbf16>
    %c0_5 = arith.constant 0 : index
    %c0_6 = arith.constant 0 : index
    %7 = vector.load %arg4[%c0_5, %c0_6] : memref<8x256xbf16, #tpu.memory_space<vmem>>, vector<8x256xbf16>
    tpu.vector_store %arg4[%c0_5, %c0_6], %6 {strides = array<i32>} : memref<8x256xbf16, #tpu.memory_space<vmem>>, vector<8x256xbf16>,
    return
  }
  func.func @transform_0(%arg0: i32) -> (i32, i32) {
    %c0_i32 = arith.constant 0 : i32
    %c0_i32_0 = arith.constant 0 : i32
    return %arg0, %c0_i32 : i32, i32
  }
  func.func @transform_1(%arg0: i32) -> (i32, i32) {
    %c0_i32 = arith.constant 0 : i32
    %c0_i32_0 = arith.constant 0 : i32
    %c0_i32_1 = arith.constant 0 : i32
    return %c0_i32, %c0_i32_0 : i32, i32
  }
  func.func @transform_2(%arg0: i32) -> (i32, i32) {
    %c0_i32 = arith.constant 0 : i32
    %c0_i32_0 = arith.constant 0 : i32
    %c0_i32_1 = arith.constant 0 : i32
    return %c0_i32, %c0_i32_0 : i32, i32
  }
  func.func @transform_3(%arg0: i32) -> (i32, i32) {
    %c0_i32 = arith.constant 0 : i32
    %c0_i32_0 = arith.constant 0 : i32
    return %arg0, %c0_i32 : i32, i32
  }
}

</mosaic_0001>

<bundles_post_ra>
// kernel: tpu_custom_call.1
= control target key start
LH: loop header
LB: loop body
LE: loop exit
PB: predicated region body
PF: predicated region fallthrough
CT: control target
= control target key end

     0   :  { %8 = vsyncpa [#allocation3], 0  ;;  %s295_s0 = inlined_call_operand.hbm [shape: bf16[8,16], index: 0, kind: input, shape index: {}]   ;;  %s296_s1 = inlined_call_operand.hbm [shape: bf16[16,256], index: 1, kind: input, shape index: {}]   ;;  %s297_s2 = inlined_call_operand.vmem [shape: f32[1,256], index: 2, kind: input, shape index: {}]   ;;  %s298_s3 = inlined_call_operand.hbm [shape: bf16[8,256], index: 3, kind: output, shape index: {}]  }
   0x1   :  { %9 = vsyncpa [#allocation6], 0 }
   0x2   :  { %10 = vsyncpa [#allocation4], 0  ;;  %s223_s12 = smov [#allocation2]   ;;  %s224_s14 = smov [#allocation5]  }
   0x3   :  { %s17_s13 = sshll.u32 %s223_s12, 4  ;;  %s26_s15 = sshll.u32 %s224_s14, 4  ;;  %s18_s13 = int_to_ptr.vmem [resolvable:$true] %s17_s13  ;;  %s249_s15 = int_to_ptr.vmem [resolvable:$true] %s26_s15 }
   0x4   :  { %s151_s18 = scalar_lea.hbm %s295_s0, 64 }
   0x5   :  { %p152_p0 = scmp.ne.s32.totalorder %s295_s0, %s151_s18  ;;  %p155_p1 = scmp.lt.u32.totalorder %s151_s18, %s295_s0 }
   0x7   :  { %p157_p2 = pnand %p155_p1, %p152_p0 }
   0x9   :  { %160 = shalt.err (!%p157_p2)
}
   0xa   :  { %s161_s23 = scalar_lea.vmem %s18_s13, 64  ;;  %p166_p4 = scmp.lt.s32.totalorder %s18_s13, %s18_s13 }
   0xb   :  { %p162_p3 = scmp.ne.s32.totalorder %s18_s13, %s161_s23  ;;  %p167_p5 = scmp.lt.s32.totalorder %s161_s23, %s161_s23 }
   0xd   :  { %p168_p6 = por %p167_p5, %p166_p4 }
   0xf   :  { %p169_p7 = pnand %p168_p6, %p162_p3 }
  0x11   :  { %172 = shalt.err (!%p169_p7)
}
  0x12   :  { %20 = dma.hbm_to_vmem [thread:$0]  %s295_s0, 64, %s18_s13, [#allocation3]  }
  0x13   :  { %s173_s28 = scalar_lea.hbm %s296_s1, 256 }
  0x14   :  { %p174_p8 = scmp.ne.s32.totalorder %s296_s1, %s173_s28  ;;  %p177_p9 = scmp.lt.u32.totalorder %s173_s28, %s296_s1 }
  0x16   :  { %p179_p10 = pnand %p177_p9, %p174_p8 }
  0x18   :  { %182 = shalt.err (!%p179_p10)
}
  0x19   :  { %s183_s6 = scalar_lea.vmem %s249_s15, 256  ;;  %p188_p12 = scmp.lt.s32.totalorder %s249_s15, %s249_s15 }
  0x1a   :  { %p184_p11 = scmp.ne.s32.totalorder %s249_s15, %s183_s6  ;;  %p189_p13 = scmp.lt.s32.totalorder %s183_s6, %s183_s6 }
  0x1c   :  { %p190_p0 = por %p189_p13, %p188_p12 }
  0x1e   :  { %p191_p1 = pnand %p190_p0, %p184_p11 }
  0x20   :  { %194 = shalt.err (!%p191_p1)
}
  0x21   :  { %s225_s0 = smov 128   ;;  %s226_s7 = smov 8  }
  0x22   :  { %32 = dma.hbm_to_vmem [thread:$0]  %s296_s1, 256, %s249_s15, [#allocation6], %s225_s0, %s225_s0, %s226_s7  }
  0x23   :  { %217 = dma.done.wait [#allocation3], 64  }
  0x24   :  { %218 = vsyncadd [#allocation3], 4294967232 }
  0x25   :  { %219 = dma.done.wait [#allocation6], 256  }
  0x26   :  { %220 = vsyncadd [#allocation6], 4294967040  ;;  %v227_v0 = vmov 0   ;;  %v148_v1 = vld [vmem:[#allocation5 + $0x4] ss:$8 sps:$4 sm:$0xff]   ;;  %vm67_vm0 = vcmask 130048   ;;  %v47_v4 = vlaneseq }
  0x27   :  { %103 = vmatprep.mubr.bf16.mxu0 %v227_v0  ;;  %v150_v2 = vld [vmem:[#allocation5] ss:$8 sps:$4 sm:$0xff]   ;;  %71 = vmatprep.subr.bf16.mxu0 %v148_v1  ;;  %v42_v3 = vld [vmem:[#allocation2] sm:$0xf]  ;;  %s228_s1 = smov [#allocation7]  }
  0x28   :  { %72 = vmatpush1.bf16.msra.mxu0 %v150_v2  ;;  %v48_v5 = vshrl.u32 %v47_v4, 7  ;;  %v45_v7 = vld [vmem:[%s297_s2] sm:$0x3]  ;;  %s127_s12 = sshll.u32 %s228_s1, 4  ;;  %s128_s12 = int_to_ptr.vmem [resolvable:$true] %s127_s12 }
  0x29   :  { %s195_s13 = scalar_lea.vmem %s128_s12, 128  ;;  %p200_p3 = scmp.lt.s32.totalorder %s128_s12, %s128_s12 }
  0x2a   :  { %v49_v6 = vsub.s32 0, %v48_v5  ;;  %v53_v8 = vsub.s32 1, %v48_v5  ;;  %p196_p2 = scmp.ne.s32.totalorder %s128_s12, %s195_s13  ;;  %p201_p4 = scmp.lt.s32.totalorder %s195_s13, %s195_s13 }
  0x2b   :  { %139 = vmatmul.mubr.msk.bf16.vlgmr.msra.gmra.mrb[0].mxu0 %vm67_vm0, %v42_v3 }
  0x2c   :  { %v50_v9 = vrot.slane %v45_v7, %v49_v6  ;;  %v54_v10 = vrot.slane %v45_v7, %v53_v8  ;;  %p202_p5 = por %p201_p4, %p200_p3 }
  0x2e   :  { %p203_p6 = pnand %p202_p5, %p196_p2 }
  0xfe   :  { %v105_v11 = vpop.f32.mrb[0].mxu0 }
  0xff   :  { %v106_v12 = vadd.f32 %v105_v11, %v50_v9  ;;  %v107_v13 = vpop.f32.mrb[1].mxu0 }
 0x100   :  { %v108_v14 = vadd.f32 %v107_v13, %v54_v10  ;;  %v109_v15 = vpop.f32.mrb[2].mxu0 }
 0x101   :  { %v110_v16 = vpop.f32.mrb[3].mxu0 }
 0x102   :  { %v141_v17 = vpack.c.bf16 %v108_v14, %v106_v12 }
 0x104   :  { %120 = vst [vmem:[#allocation7] sm:$0xff] %v141_v17 }
 0x105   :  { %206 = shalt.err (!%p203_p6)
}
 0x106   :  { %s207_s15 = scalar_lea.hbm %s298_s3, 128 }
 0x107   :  { %p208_p7 = scmp.ne.s32.totalorder %s298_s3, %s207_s15  ;;  %p211_p8 = scmp.lt.u32.totalorder %s207_s15, %s298_s3 }
 0x109   :  { %p213_p9 = pnand %p211_p8, %p208_p7 }
 0x10b   :  { %216 = shalt.err (!%p213_p9)
}
 0x10c   :  { %130 = dma.vmem_to_hbm [thread:$0]  %s128_s12, 128, %s298_s3, [#allocation4]  }
 0x10d   :  { %221 = dma.done.wait [#allocation4], 128  }
 0x10e   :  { %222 = vsyncadd [#allocation4], 4294967168 }
 0x10f   :  { %134 = vsyncpa [#allocation3], 1 }
 0x110   :  { %135 = vsyncpa [#allocation6], 1 }
 0x111   :  { %136 = vsyncpa [#allocation4], 1 }

</bundles_post_ra>
